<compile_context>
chip_gen: v7x
topology: tpu7x:2x2x1
jax: 0.10.0
libtpu: 0.0.40
codegen_flags: <defaults>
</compile_context>

<pallas_src>
import functools
import math

import jax
import jax.numpy as jnp
from jax import lax
from jax.experimental import pallas as pl
from jax.experimental.pallas import tpu as pltpu

_LANE = 128
_SUBLANE = 8


def _block_kernel(x_ref, w_ref, b_ref, gamma_ref, beta_ref, gsel_ref, out_ref,
                  *, D, H, W, KC, td, th, cpg, eps):
    """One (sample, channel-tile) grid step: conv taps -> GroupNorm -> SiLU.

    x_ref    : (S, KC) bf16               if td == th == 1 (all taps unfolded)
               (D+2, Hp*W, KC) bf16       otherwise (kd / kh halos sliced here)
    w_ref    : (T, KC, Ct) bf16           T = td*th remaining taps
    b_ref    : (1, Ct)  f32               conv bias
    gamma_ref: (1, Ct)  f32               GroupNorm weight
    beta_ref : (1, Ct)  f32               GroupNorm bias
    gsel_ref : (Gt, Ct) f32               one-hot tile-local group membership
    out_ref  : (S, Ct)  f32               output; doubles as the conv accumulator
    """
    S = D * H * W
    T = td * th

    # ---- Conv3d (3x3x3, padding=1) ----
    if T == 1:
        # All 27 taps folded into K: one fat MXU matmul, no accumulator pass.
        out_ref[...] = (jnp.dot(x_ref[...], w_ref[0],
                                preferred_element_type=jnp.float32)
                        + b_ref[...])
    else:
        # Remaining (kd, kh) taps: slice outer halo dims only (full row /
        # channel extents -> no narrow strided relayouts); accumulate directly
        # in out_ref (no separate f32 scratch).
        for kd in range(td):
            for kh in range(th):
                t = kd * th + kh
                slab = x_ref[kd:kd + D, kh * W:kh * W + H * W, :]
                part = jnp.dot(slab.reshape(S, KC), w_ref[t],
                               preferred_element_type=jnp.float32)
                if t == 0:
                    out_ref[...] = part + b_ref[...]
                else:
                    out_ref[...] += part

    # ---- GroupNorm statistics: single fused pass (sum & sum-of-squares) ----
    # Uncentered variance E[x^2] - E[x]^2 in f32 (fine at activation scale,
    # saves a full read of the buffer compared with the centered two-pass form).
    gsel = gsel_ref[...]                                          # (Gt, Ct)
    inv_n = 1.0 / float(S * cpg)
    y = out_ref[...]                                              # conv + bias
    s1 = jnp.sum(y, axis=0, keepdims=True)                        # (1, Ct)
    s2 = jnp.sum(y * y, axis=0, keepdims=True)                    # (1, Ct)
    mean_g = jnp.sum(s1 * gsel, axis=1, keepdims=True) * inv_n    # (Gt, 1)
    msq_g = jnp.sum(s2 * gsel, axis=1, keepdims=True) * inv_n     # (Gt, 1)
    inv_g = lax.rsqrt(msq_g - mean_g * mean_g + eps)              # (Gt, 1)
    mean_c = jnp.sum(mean_g * gsel, axis=0, keepdims=True)        # (1, Ct)
    inv_c = jnp.sum(inv_g * gsel, axis=0, keepdims=True)          # (1, Ct)

    scale = inv_c * gamma_ref[...]                                # (1, Ct)
    shift = beta_ref[...] - mean_c * scale                        # (1, Ct)

    # ---- affine + SiLU: second (final) pass, one full-width store ----
    yn = out_ref[...] * scale + shift
    out_ref[...] = yn * jax.nn.sigmoid(yn)


def _vmem_block_bytes(shape, itemsize):
    """VMEM footprint of one block, accounting for (sublane, lane) padding."""
    s = list(shape)
    if len(s) >= 1:
        s[-1] = -(-s[-1] // _LANE) * _LANE
    if len(s) >= 2:
        s[-2] = -(-s[-2] // _SUBLANE) * _SUBLANE
    n = 1
    for d in s:
        n *= int(d)
    return n * itemsize


def block_forward_ndhwc(x, conv_w, conv_b, gamma, beta, *, groups=8, eps=1e-5,
                        conv_dtype=jnp.bfloat16):
    """Conv3d(3, pad=1) + GroupNorm + SiLU, channels-last (no layout transposes).

    x      : (N, D, H, W, Cin)
    conv_w : (Cout, Cin, 3, 3, 3)   (PyTorch OIDHW layout)
    conv_b, gamma, beta : (Cout,)
    Returns (N, D, H, W, Cout) float32.

    Note: conv inputs / weights are cast to `conv_dtype` (default bf16) for the
    MXU; accumulation and GroupNorm math stay f32 (intentional, documented
    deviation from the all-f32 PyTorch module).
    """
    N, D, H, W, Cin = x.shape
    Cout = conv_w.shape[0]
    assert conv_w.shape == (Cout, Cin, 3, 3, 3)
    assert Cout % groups == 0
    cpg = Cout // groups
    S = D * H * W

    # ---- adaptive tap unfolding: K pads to 128 lanes anyway, so folding taps
    #      into it is free for small Cin and cuts 9 MXU taps down to 3 or 1. ----
    unfold_h = 9 * Cin <= _LANE
    unfold_d = 27 * Cin <= _LANE          # implies unfold_h
    td = 1 if unfold_d else 3             # D-axis taps still looped in-kernel
    th = 1 if unfold_h else 3             # H-axis taps still looped in-kernel
    T = td * th
    KC = (27 // T) * Cin

    xb = x.astype(conv_dtype)
    # One padded copy + one concat builds the unfolded, halo-padded input
    # (single wrapper-side HBM materialization, in bf16).
    xp = jnp.pad(xb, ((0, 0), (1, 1), (1, 1), (1, 1), (0, 0)))
    parts = []
    for kd in (range(3) if unfold_d else (None,)):
        for kh in (range(3) if unfold_h else (None,)):
            for kw in range(3):
                sl_d = slice(kd, kd + D) if unfold_d else slice(None)
                sl_h = slice(kh, kh + H) if unfold_h else slice(None)
                parts.append(xp[:, sl_d, sl_h, kw:kw + W, :])
    xu = jnp.concatenate(parts, axis=-1)          # (N, Dp, Hp, W, KC)
    Dp = D if unfold_d else D + 2
    Hp = H if unfold_h else H + 2
    if T == 1:
        xk = xu.reshape(N, S, KC)                 # fully flat: no in-kernel reshape
    else:
        # TODO(synk): keep H*W a multiple of 8 (sublane) so the in-kernel
        #             slab.reshape(S, KC) stays a pure tiled-layout collapse.
        xk = xu.reshape(N, Dp, Hp * W, KC)

    # weights: (Cout, Cin, kd, kh, kw) -> (kd, kh, kw, ci, co) -> (T, KC, Cout)
    wk = jnp.transpose(conv_w, (2, 3, 4, 1, 0)).reshape(T, KC, Cout)
    wk = wk.astype(conv_dtype)

    bias2 = conv_b.reshape(1, Cout).astype(jnp.float32)
    gamma2 = gamma.reshape(1, Cout).astype(jnp.float32)
    beta2 = beta.reshape(1, Cout).astype(jnp.float32)

    # ---- channel tiling: whole groups per tile; only tile when VMEM demands ----
    in_bytes = _vmem_block_bytes(xk.shape[1:], 2)

    def step_vmem(ct):
        return (2 * in_bytes                                   # x block, double-buffered
                + 2 * _vmem_block_bytes((T, KC, ct), 2)        # weights
                + 2 * _vmem_block_bytes((S, ct), 4)            # out block (also the acc)
                + 8 * _vmem_block_bytes((1, ct), 4))           # bias/gamma/beta/gsel

    budget = 40 * 2 ** 20          # stay well under v7x's 64 MiB physical VMEM
    cands = [d for d in range(1, groups + 1)
             if groups % d == 0 and (d == 1 or (Cout // d) % _LANE == 0)]
    n_ct = next((d for d in cands if step_vmem(Cout // d) <= budget), cands[-1])
    Ct = Cout // n_ct
    Gt = Ct // cpg
    vmem_limit = int(min(100 * 2 ** 20,
                         max(32 * 2 ** 20, step_vmem(Ct) + 8 * 2 ** 20)))

    # one-hot tile-local group membership (identical for every channel tile)
    gsel = (jnp.arange(Gt)[:, None] == (jnp.arange(Ct) // cpg)[None, :])
    gsel = gsel.astype(jnp.float32)

    kernel = functools.partial(_block_kernel, D=D, H=H, W=W, KC=KC,
                               td=td, th=th, cpg=cpg, eps=eps)

    if T == 1:
        x_spec = pl.BlockSpec((pl.Squeezed(), S, KC), lambda n, j: (n, 0, 0))
    else:
        x_spec = pl.BlockSpec((pl.Squeezed(), Dp, Hp * W, KC),
                              lambda n, j: (n, 0, 0, 0))

    out = pl.pallas_call(
        kernel,
        out_shape=jax.ShapeDtypeStruct((N, S, Cout), jnp.float32),
        grid=(N, n_ct),
        in_specs=[
            x_spec,
            pl.BlockSpec((T, KC, Ct), lambda n, j: (0, 0, j)),
            pl.BlockSpec((1, Ct), lambda n, j: (0, j)),
            pl.BlockSpec((1, Ct), lambda n, j: (0, j)),
            pl.BlockSpec((1, Ct), lambda n, j: (0, j)),
            pl.BlockSpec((Gt, Ct), lambda n, j: (0, 0)),
        ],
        out_specs=pl.BlockSpec((pl.Squeezed(), S, Ct), lambda n, j: (n, 0, j)),
        compiler_params=pltpu.CompilerParams(
            dimension_semantics=("parallel", "parallel"),
            vmem_limit_bytes=vmem_limit),
    )(xk, wk, bias2, gamma2, beta2, gsel)

    return out.reshape(N, D, H, W, Cout)


def block_forward(x_ncdhw, conv_w, conv_b, gamma, beta, *, groups=8, eps=1e-5):
    """Drop-in NCDHW wrapper matching the PyTorch module's layout.

    TODO(synk): keep the surrounding model channels-last (NDHWC) end-to-end and
    call block_forward_ndhwc directly; these two transposes are pure HBM
    relayout traffic (the entry one is done in bf16 to halve it).
    """
    x = jnp.transpose(x_ncdhw.astype(jnp.bfloat16), (0, 2, 3, 4, 1))
    y = block_forward_ndhwc(x, conv_w, conv_b, gamma, beta, groups=groups, eps=eps)
    return jnp.transpose(y, (0, 4, 1, 2, 3))


def _reference(x, w, b, gamma, beta, *, groups=8, eps=1e-5):
    """Pure-JAX f32 reference matching the PyTorch module semantics (NCDHW)."""
    y = lax.conv_general_dilated(
        x, w, window_strides=(1, 1, 1),
        padding=((1, 1), (1, 1), (1, 1)),
        dimension_numbers=("NCDHW", "OIDHW", "NCDHW"))
    y = y + b[None, :, None, None, None]
    N, C, D, H, W = y.shape
    yg = y.reshape(N, groups, C // groups, D, H, W)
    mean = yg.mean(axis=(2, 3, 4, 5), keepdims=True)
    var = ((yg - mean) ** 2).mean(axis=(2, 3, 4, 5), keepdims=True)
    yn = ((yg - mean) * lax.rsqrt(var + eps)).reshape(N, C, D, H, W)
    yn = yn * gamma[None, :, None, None, None] + beta[None, :, None, None, None]
    return yn * jax.nn.sigmoid(yn)


if __name__ == "__main__":
    N, Cin, Cout, groups = 2, 4, 16, 8
    D, H, W = 4, 8, 8

    key = jax.random.PRNGKey(0)
    k1, k2, k3, k4, k5 = jax.random.split(key, 5)

    fan_in = Cin * 27
    conv_w = jax.random.normal(k1, (Cout, Cin, 3, 3, 3), jnp.float32) / math.sqrt(fan_in)
    conv_b = 0.1 * jax.random.normal(k2, (Cout,), jnp.float32)
    gamma = 1.0 + 0.1 * jax.random.normal(k3, (Cout,), jnp.float32)
    beta = 0.1 * jax.random.normal(k4, (Cout,), jnp.float32)
    x = jax.random.normal(k5, (N, Cin, D, H, W), jnp.float32)

    # Snap x / conv weights to bf16-representable values so the kernel's bf16
    # MXU path and the f32 reference see identical data (keeps tolerance tight;
    # accumulation and GroupNorm are f32 in both).
    x = x.astype(jnp.bfloat16).astype(jnp.float32)
    conv_w = conv_w.astype(jnp.bfloat16).astype(jnp.float32)

    out = block_forward(x, conv_w, conv_b, gamma, beta, groups=groups)
    out = jax.block_until_ready(out)

    ref = _reference(x, conv_w, conv_b, gamma, beta, groups=groups)
    assert out.shape == (N, Cout, D, H, W)
    err = jnp.max(jnp.abs(out - ref))
    assert jnp.allclose(out, ref, rtol=2e-3, atol=2e-3), f"max abs err {err}"

    print("KERNEL_OK")
</pallas_src>

<mosaic_0001>
module attributes {stable_mosaic.version = 11 : i64} {
  func.func @_block_kernel(%arg0: i32, %arg1: i32, %arg2: memref<1x256x108xbf16, #tpu.memory_space<vmem>>, %arg3: memref<1x108x16xbf16, #tpu.memory_space<vmem>>, %arg4: memref<1x16xf32, #tpu.memory_space<vmem>>, %arg5: memref<1x16xf32, #tpu.memory_space<vmem>>, %arg6: memref<1x16xf32, #tpu.memory_space<vmem>>, %arg7: memref<8x16xf32, #tpu.memory_space<vmem>>, %arg8: memref<1x256x16xf32, #tpu.memory_space<vmem>>) attributes {dimension_semantics = [#tpu.dimension_semantics<parallel>, #tpu.dimension_semantics<parallel>], iteration_bounds = array<i64: 2, 1>, scalar_prefetch = 0 : i64, scratch_operands = 0 : i64, tpu.core_type = #tpu.core_type<tc>, window_params = [{transform_indices = @transform_0, window_bounds = array<i64: 1, 256, 108>}, {transform_indices = @transform_1, window_bounds = array<i64: 1, 108, 16>}, {transform_indices = @transform_2, window_bounds = array<i64: 1, 16>}, {transform_indices = @transform_3, window_bounds = array<i64: 1, 16>}, {transform_indices = @transform_4, window_bounds = array<i64: 1, 16>}, {pipeline_mode = #tpu.pipeline_mode<synchronous>, transform_indices = @transform_5, window_bounds = array<i64: 8, 16>}, {transform_indices = @transform_6, window_bounds = array<i64: 1, 256, 16>}]} {
    %c0 = arith.constant 0 : index
    %c0_0 = arith.constant 0 : index
    %c0_1 = arith.constant 0 : index
    %0 = vector.load %arg2[%c0, %c0_0, %c0_1] : memref<1x256x108xbf16, #tpu.memory_space<vmem>>, vector<1x256x108xbf16>
    %1 = vector.shape_cast %0 : vector<1x256x108xbf16> to vector<256x108xbf16>
    %c0_2 = arith.constant 0 : index
    %c0_3 = arith.constant 0 : index
    %c0_4 = arith.constant 0 : index
    %2 = vector.load %arg3[%c0_2, %c0_3, %c0_4] : memref<1x108x16xbf16, #tpu.memory_space<vmem>>, vector<1x108x16xbf16>
    %3 = vector.shape_cast %2 : vector<1x108x16xbf16> to vector<108x16xbf16>
    %cst = arith.constant dense<0.000000e+00> : vector<256x16xf32>
    %4 = tpu.matmul %1, %3, %cst {dimension_numbers = #tpu.dot_dimension_numbers<[1], [0], [0], [1], [0, 0, 1, 1], [], []>} : vector<256x108xbf16>, vector<108x16xbf16>, vector<256x16xf32> -> vector<256x16xf32>
    %c0_5 = arith.constant 0 : index
    %c0_6 = arith.constant 0 : index
    %5 = vector.load %arg4[%c0_5, %c0_6] : memref<1x16xf32, #tpu.memory_space<vmem>>, vector<1x16xf32>
    %6 = vector.broadcast %5 : vector<1x16xf32> to vector<256x16xf32>
    %7 = arith.addf %4, %6 : vector<256x16xf32>
    %c0_7 = arith.constant 0 : index
    %c0_8 = arith.constant 0 : index
    %c0_9 = arith.constant 0 : index
    %8 = vector.load %arg8[%c0_7, %c0_8, %c0_9] : memref<1x256x16xf32, #tpu.memory_space<vmem>>, vector<1x256x16xf32>
    %9 = vector.shape_cast %8 : vector<1x256x16xf32> to vector<256x16xf32>
    %10 = vector.shape_cast %7 : vector<256x16xf32> to vector<1x256x16xf32>
    tpu.vector_store %arg8[%c0_7, %c0_8, %c0_9], %10 {strides = array<i32>} : memref<1x256x16xf32, #tpu.memory_space<vmem>>, vector<1x256x16xf32>,
    %c0_10 = arith.constant 0 : index
    %c0_11 = arith.constant 0 : index
    %11 = vector.load %arg7[%c0_10, %c0_11] : memref<8x16xf32, #tpu.memory_space<vmem>>, vector<8x16xf32>
    %c0_12 = arith.constant 0 : index
    %c0_13 = arith.constant 0 : index
    %c0_14 = arith.constant 0 : index
    %12 = vector.load %arg8[%c0_12, %c0_13, %c0_14] : memref<1x256x16xf32, #tpu.memory_space<vmem>>, vector<1x256x16xf32>
    %13 = vector.shape_cast %12 : vector<1x256x16xf32> to vector<256x16xf32>
    %cst_15 = arith.constant dense<0.000000e+00> : vector<16xf32>
    %14 = vector.multi_reduction <add>, %13, %cst_15 [0] : vector<256x16xf32> to vector<16xf32>
    %15 = vector.shape_cast %14 : vector<16xf32> to vector<1x16xf32>
    %16 = arith.mulf %13, %13 : vector<256x16xf32>
    %cst_16 = arith.constant dense<0.000000e+00> : vector<16xf32>
    %17 = vector.multi_reduction <add>, %16, %cst_16 [0] : vector<256x16xf32> to vector<16xf32>
    %18 = vector.shape_cast %17 : vector<16xf32> to vector<1x16xf32>
    %19 = vector.broadcast %15 : vector<1x16xf32> to vector<8x16xf32>
    %20 = arith.mulf %19, %11 : vector<8x16xf32>
    %cst_17 = arith.constant dense<0.000000e+00> : vector<8xf32>
    %21 = vector.multi_reduction <add>, %20, %cst_17 [1] : vector<8x16xf32> to vector<8xf32>
    %22 = vector.shape_cast %21 : vector<8xf32> to vector<8x1xf32>
    %cst_18 = arith.constant 0.001953125 : f32
    %23 = vector.broadcast %cst_18 : f32 to vector<8x1xf32>
    %24 = arith.mulf %22, %23 : vector<8x1xf32>
    %25 = vector.broadcast %18 : vector<1x16xf32> to vector<8x16xf32>
    %26 = arith.mulf %25, %11 : vector<8x16xf32>
    %cst_19 = arith.constant dense<0.000000e+00> : vector<8xf32>
    %27 = vector.multi_reduction <add>, %26, %cst_19 [1] : vector<8x16xf32> to vector<8xf32>
    %28 = vector.shape_cast %27 : vector<8xf32> to vector<8x1xf32>
    %cst_20 = arith.constant 0.001953125 : f32
    %29 = vector.broadcast %cst_20 : f32 to vector<8x1xf32>
    %30 = arith.mulf %28, %29 : vector<8x1xf32>
    %31 = arith.mulf %24, %24 : vector<8x1xf32>
    %32 = arith.subf %30, %31 : vector<8x1xf32>
    %cst_21 = arith.constant 9.99999974E-6 : f32
    %33 = vector.broadcast %cst_21 : f32 to vector<8x1xf32>
    %34 = arith.addf %32, %33 : vector<8x1xf32>
    %35 = math.rsqrt %34 : vector<8x1xf32>
    %36 = vector.broadcast %24 : vector<8x1xf32> to vector<8x16xf32>
    %37 = arith.mulf %36, %11 : vector<8x16xf32>
    %cst_22 = arith.constant dense<0.000000e+00> : vector<16xf32>
    %38 = vector.multi_reduction <add>, %37, %cst_22 [0] : vector<8x16xf32> to vector<16xf32>
    %39 = vector.shape_cast %38 : vector<16xf32> to vector<1x16xf32>
    %40 = vector.broadcast %35 : vector<8x1xf32> to vector<8x16xf32>
    %41 = arith.mulf %40, %11 : vector<8x16xf32>
    %cst_23 = arith.constant dense<0.000000e+00> : vector<16xf32>
    %42 = vector.multi_reduction <add>, %41, %cst_23 [0] : vector<8x16xf32> to vector<16xf32>
    %43 = vector.shape_cast %42 : vector<16xf32> to vector<1x16xf32>
    %c0_24 = arith.constant 0 : index
    %c0_25 = arith.constant 0 : index
    %44 = vector.load %arg5[%c0_24, %c0_25] : memref<1x16xf32, #tpu.memory_space<vmem>>, vector<1x16xf32>
    %45 = arith.mulf %43, %44 : vector<1x16xf32>
    %c0_26 = arith.constant 0 : index
    %c0_27 = arith.constant 0 : index
    %46 = vector.load %arg6[%c0_26, %c0_27] : memref<1x16xf32, #tpu.memory_space<vmem>>, vector<1x16xf32>
    %47 = arith.mulf %39, %45 : vector<1x16xf32>
    %48 = arith.subf %46, %47 : vector<1x16xf32>
    %c0_28 = arith.constant 0 : index
    %c0_29 = arith.constant 0 : index
    %c0_30 = arith.constant 0 : index
    %49 = vector.load %arg8[%c0_28, %c0_29, %c0_30] : memref<1x256x16xf32, #tpu.memory_space<vmem>>, vector<1x256x16xf32>
    %50 = vector.shape_cast %49 : vector<1x256x16xf32> to vector<256x16xf32>
    %51 = vector.broadcast %45 : vector<1x16xf32> to vector<256x16xf32>
    %52 = arith.mulf %50, %51 : vector<256x16xf32>
    %53 = vector.broadcast %48 : vector<1x16xf32> to vector<256x16xf32>
    %54 = arith.addf %52, %53 : vector<256x16xf32>
    %55 = arith.negf %54 : vector<256x16xf32>
    %56 = math.exp %55 : vector<256x16xf32>
    %cst_31 = arith.constant 1.000000e+00 : f32
    %57 = vector.broadcast %cst_31 : f32 to vector<256x16xf32>
    %58 = arith.addf %57, %56 : vector<256x16xf32>
    %59 = arith.divf %57, %58 : vector<256x16xf32>
    %60 = arith.mulf %54, %59 : vector<256x16xf32>
    %c0_32 = arith.constant 0 : index
    %c0_33 = arith.constant 0 : index
    %c0_34 = arith.constant 0 : index
    %61 = vector.load %arg8[%c0_32, %c0_33, %c0_34] : memref<1x256x16xf32, #tpu.memory_space<vmem>>, vector<1x256x16xf32>
    %62 = vector.shape_cast %61 : vector<1x256x16xf32> to vector<256x16xf32>
    %63 = vector.shape_cast %60 : vector<256x16xf32> to vector<1x256x16xf32>
    tpu.vector_store %arg8[%c0_32, %c0_33, %c0_34], %63 {strides = array<i32>} : memref<1x256x16xf32, #tpu.memory_space<vmem>>, vector<1x256x16xf32>,
    return
  }
  func.func @transform_0(%arg0: i32, %arg1: i32) -> (i32, i32, i32) {
    %c0_i32 = arith.constant 0 : i32
    %c0_i32_0 = arith.constant 0 : i32
    %c0_i32_1 = arith.constant 0 : i32
    return %arg0, %c0_i32, %c0_i32_0 : i32, i32, i32
  }
  func.func @transform_1(%arg0: i32, %arg1: i32) -> (i32, i32, i32) {
    %c0_i32 = arith.constant 0 : i32
    %c0_i32_0 = arith.constant 0 : i32
    %c0_i32_1 = arith.constant 0 : i32
    return %c0_i32, %c0_i32_0, %arg1 : i32, i32, i32
  }
  func.func @transform_2(%arg0: i32, %arg1: i32) -> (i32, i32) {
    %c0_i32 = arith.constant 0 : i32
    %c0_i32_0 = arith.constant 0 : i32
    return %c0_i32, %arg1 : i32, i32
  }
  func.func @transform_3(%arg0: i32, %arg1: i32) -> (i32, i32) {
    %c0_i32 = arith.constant 0 : i32
    %c0_i32_0 = arith.constant 0 : i32
    return %c0_i32, %arg1 : i32, i32
  }
  func.func @transform_4(%arg0: i32, %arg1: i32) -> (i32, i32) {
    %c0_i32 = arith.constant 0 : i32
    %c0_i32_0 = arith.constant 0 : i32
    return %c0_i32, %arg1 : i32, i32
  }
  func.func @transform_5(%arg0: i32, %arg1: i32) -> (i32, i32) {
    %c0_i32 = arith.constant 0 : i32
    %c0_i32_0 = arith.constant 0 : i32
    %c0_i32_1 = arith.constant 0 : i32
    return %c0_i32, %c0_i32_0 : i32, i32
  }
  func.func @transform_6(%arg0: i32, %arg1: i32) -> (i32, i32, i32) {
    %c0_i32 = arith.constant 0 : i32
    %c0_i32_0 = arith.constant 0 : i32
    return %arg0, %c0_i32, %arg1 : i32, i32, i32
  }
}

</mosaic_0001>

<bundles_post_ra>
// kernel: tpu_custom_call.1
= control target key start
LH: loop header
LB: loop body
LE: loop exit
PB: predicated region body
PF: predicated region fallthrough
CT: control target
= control target key end

     0   :  { %s1860_s21 = smov 0   ;;  %s1862_s22 = smov 0   ;;  %s2676_s0 = inlined_call_operand.vmem [shape: bf16[2,256,108], index: 0, kind: input, shape index: {}]   ;;  %s2677_s1 = inlined_call_operand.vmem [shape: bf16[1,108,16], index: 1, kind: input, shape index: {}]   ;;  %s2678_s2 = inlined_call_operand.vmem [shape: f32[1,16], index: 2, kind: input, shape index: {}]   ;;  %s2679_s3 = inlined_call_operand.vmem [shape: f32[1,16], index: 3, kind: input, shape index: {}]   ;;  %s2680_s4 = inlined_call_operand.vmem [shape: f32[1,16], index: 4, kind: input, shape index: {}]   ;;  %s2681_s5 = inlined_call_operand.vmem [shape: f32[8,16], index: 5, kind: input, shape index: {}]   ;;  %s2682_s6 = inlined_call_operand.vmem [shape: f32[2,256,16], index: 6, kind: output, shape index: {}]  }
   0x1   :  { %s1864_s23 = smov 0  }
   0x2 LB: > { %s28_s24 = sadd.s32 1, %s1819_s22  ;;  %p1458_p0 = scmp.ge.s32.totalorder %s1823_s23, 1  ;;  %s1823_s23 = sphi %s1864_s23, %s16_s23   ;;  %s1819_s22 = sphi %s1862_s22, %s2690_s22   ;;  %s1815_s21 = sphi %s1860_s21, %s2689_s21  }
   0x3   : > { %p30_p1 = scmp.ge.s32.totalorder %s28_s24, 2  ;;  %p259_p2 = scmp.lt.s32.totalorder %s1823_s23, 3 }
   0x5   : > { %s2692_s24 = smov (%p30_p1, %s28_s24), 0  ;;  %p260_p3 = pnand %p1458_p0, %p259_p2 }
   0x7   : > { %263 = sbr.rel (%p260_p3) target bundleno = 613 (0x265), region = 44 }
   0xe   : > { %v1648_v0 = vld [vmem:[%s2677_s1] sm:$0xff]   ;;  %v1649_v1 = vld [vmem:[%s2677_s1 + $0x8] sm:$0xff]   ;;  %p305_p4 = scmp.lt.s32.totalorder %s1815_s21, 1  ;;  %v1650_v2 = vld [vmem:[%s2677_s1 + $0x10] sm:$0xff]   ;;  %vm506_vm0 = vcmask 883712   ;;  %vm555_vm1 = vcmask 1045504  }
   0xf   : > { %1562 = vmatprep.subr.bf16.mxu0 %v1648_v0  ;;  %1608 = vmatprep.subr.bf16.mxu1 %v1648_v0  ;;  %v1651_v4 = vld [vmem:[%s2677_s1 + $0x18] sm:$0xff]   ;;  %v1652_v5 = vld [vmem:[%s2677_s1 + $0x20] sm:$0xff]   ;;  %v1653_v7 = vld [vmem:[%s2677_s1 + $0x28] sm:$0xff]   ;;  %vm720_vm2 = vcmask 130048  }
  0x10   : > { %1563 = vmatpush3.bf16.msra.mxu0 %v1648_v0  ;;  %s2694_s21 = smov (!%p305_p4, %s1815_s21), 1  ;;  %1615 = vmatpush3.bf16.msra.mxu1 %v1648_v0  ;;  %v1654_v8 = vld [vmem:[%s2677_s1 + $0x30] sm:$0x3f]   ;;  %v1943_v24 = vld [vmem:[%s2678_s2] ss:$0 sm:$0xff] }
  0x11   : > { %1564 = vmatprep.subr.bf16.mxu0 %v1649_v1  ;;  %1609 = vmatprep.subr.bf16.mxu1 %v1649_v1  ;;  %s1537_s7 = sshll.u32 %s2694_s21, 7  ;;  %v557_v9 = vsel %vm555_vm1, %v1654_v8, 0  ;;  %s1538_s19 = sshll.u32 %s2694_s21, 8 }
  0x12   : > { %s1893_s10 = scalar_lea.vmem %s2676_s0, %s1537_s7  ;;  %s1948_s28 = scalar_lea.vmem %s2682_s6, %s1538_s19 }
  0x13   : > { %v1655_v3 = vld [vmem:[%s1893_s10] sm:$0xff]   ;;  %v1656_v10 = vld [vmem:[%s1893_s10 + $0x8] sm:$0xff]   ;;  %v1657_v12 = vld [vmem:[%s1893_s10 + $0x10] sm:$0xff]  }
  0x14   : > { %1565 = vmatpush3.bf16.msra.mxu0 %v1649_v1  ;;  %1616 = vmatpush3.bf16.msra.mxu1 %v1649_v1  ;;  %v1663_v6 = vld [vmem:[%s1893_s10 + $0x40] sm:$0xff]   ;;  %v1664_v11 = vld [vmem:[%s1893_s10 + $0x48] sm:$0xff]   ;;  %v1665_v13 = vld [vmem:[%s1893_s10 + $0x50] sm:$0xff]  }
  0x15   : > { %1566 = vmatprep.subr.bf16.mxu0 %v1650_v2  ;;  %1610 = vmatprep.subr.bf16.mxu1 %v1650_v2  ;;  %v1658_v14 = vld [vmem:[%s1893_s10 + $0x18] sm:$0xff]   ;;  %v1659_v16 = vld [vmem:[%s1893_s10 + $0x20] sm:$0xff]   ;;  %v1660_v18 = vld [vmem:[%s1893_s10 + $0x28] sm:$0xff]  }
  0x16   : > { %1576 = vmatprep.mubr.msk.bf16.mxu0 %vm506_vm0, %v1655_v3  ;;  %1592 = vmatprep.mubr.msk.bf16.mxu1 %vm506_vm0, %v1663_v6  ;;  %v1666_v15 = vld [vmem:[%s1893_s10 + $0x58] sm:$0xff]   ;;  %v1667_v17 = vld [vmem:[%s1893_s10 + $0x60] sm:$0xff]   ;;  %v1668_v19 = vld [vmem:[%s1893_s10 + $0x68] sm:$0xff]  }
  0x17   : > { %v1661_v20 = vld [vmem:[%s1893_s10 + $0x30] sm:$0xff]   ;;  %v1662_v22 = vld [vmem:[%s1893_s10 + $0x38] sm:$0xff]  }
  0x18   : > { %1567 = vmatpush3.bf16.msra.mxu0 %v1650_v2  ;;  %1617 = vmatpush3.bf16.msra.mxu1 %v1650_v2  ;;  %v1669_v21 = vld [vmem:[%s1893_s10 + $0x70] sm:$0xff]   ;;  %v1670_v23 = vld [vmem:[%s1893_s10 + $0x78] sm:$0xff]  }
  0x19   : > { %1568 = vmatprep.subr.bf16.mxu0 %v1651_v4  ;;  %1611 = vmatprep.subr.bf16.mxu1 %v1651_v4 }
  0x1c   : > { %1569 = vmatpush3.bf16.msra.mxu0 %v1651_v4  ;;  %1618 = vmatpush3.bf16.msra.mxu1 %v1651_v4 }
  0x1d   : > { %1570 = vmatprep.subr.bf16.mxu0 %v1652_v5  ;;  %1612 = vmatprep.subr.bf16.mxu1 %v1652_v5 }
  0x20   : > { %1571 = vmatpush3.bf16.msra.mxu0 %v1652_v5  ;;  %1619 = vmatpush3.bf16.msra.mxu1 %v1652_v5 }
  0x21   : > { %1572 = vmatprep.subr.bf16.mxu0 %v1653_v7  ;;  %1613 = vmatprep.subr.bf16.mxu1 %v1653_v7 }
  0x24   : > { %1573 = vmatpush3.bf16.msra.mxu0 %v1653_v7  ;;  %1620 = vmatpush3.bf16.msra.mxu1 %v1653_v7 }
  0x25   : > { %1622 = vmatprep.subr.msk.bf16.mxu0 %vm555_vm1, %v1654_v8  ;;  %1623 = vmatprep.subr.msk.bf16.mxu1 %vm555_vm1, %v1654_v8 }
  0x28   : > { %1575 = vmatpush3.bf16.msra.mxu0 %v557_v9  ;;  %1621 = vmatpush3.bf16.msra.mxu1 %v557_v9 }
  0x2b   : > { %1577 = vmatmul.mubr.msk.bf16.vlgmr.msra.gmra.mrb[0].mxu0 %vm506_vm0, %v1656_v10  ;;  %1593 = vmatmul.mubr.msk.bf16.vlgmr.msra.gmra.mrb[0].mxu1 %vm506_vm0, %v1664_v11 }
  0x2c   : > { %1580 = vmatprep.mubr.msk.bf16.mxu0 %vm506_vm0, %v1657_v12  ;;  %1596 = vmatprep.mubr.msk.bf16.mxu1 %vm506_vm0, %v1665_v13 }
  0x33   : > { %1581 = vmatmul.mubr.msk.bf16.gmra.mrb[4].mxu0 %vm506_vm0, %v1658_v14  ;;  %1597 = vmatmul.mubr.msk.bf16.gmra.mrb[4].mxu1 %vm506_vm0, %v1666_v15 }
  0x34   : > { %1584 = vmatprep.mubr.msk.bf16.mxu0 %vm506_vm0, %v1659_v16  ;;  %1600 = vmatprep.mubr.msk.bf16.mxu1 %vm506_vm0, %v1667_v17 }
  0x3b   : > { %1585 = vmatmul.mubr.msk.bf16.gmra.mrb[8].mxu0 %vm506_vm0, %v1660_v18  ;;  %1601 = vmatmul.mubr.msk.bf16.gmra.mrb[8].mxu1 %vm506_vm0, %v1668_v19 }
  0x3c   : > { %1588 = vmatprep.mubr.msk.bf16.mxu0 %vm506_vm0, %v1661_v20  ;;  %1604 = vmatprep.mubr.msk.bf16.mxu1 %vm506_vm0, %v1669_v21 }
  0x43   : > { %1589 = vmatmul.mubr.msk.bf16.gmra.mrb[12].mxu0 %vm506_vm0, %v1662_v22  ;;  %1605 = vmatmul.mubr.msk.bf16.gmra.mrb[12].mxu1 %vm506_vm0, %v1670_v23 }
  0xfe   : > { %v1578_v25 = vpop.f32.mrb[0].mxu0  ;;  %v1594_v26 = vpop.f32.mrb[0].mxu1 }
  0xff   : > { %v602_v27 = vadd.f32 %v1578_v25, %v1943_v24  ;;  %v593_v28 = vpop.f32.mrb[1].mxu0  ;;  %v666_v29 = vadd.f32 %v1594_v26, %v1943_v24  ;;  %v657_v30 = vpop.f32.mrb[1].mxu1 }
 0x100   : > { %v594_v31 = vadd.f32 %v1943_v24, %v593_v28  ;;  %v1579_v32 = vpop.f32.mrb[2].mxu0  ;;  %v658_v33 = vadd.f32 %v1943_v24, %v657_v30  ;;  %v1595_v34 = vpop.f32.mrb[2].mxu1 }
 0x101   : > { %723 = vst.msk [vmem:[%s1948_s28 + $0x10] sm:$0xff] %vm720_vm2, %v602_v27  ;;  %v605_v35 = vadd.f32 %v1579_v32, %v1943_v24  ;;  %v596_v36 = vpop.f32.mrb[3].mxu0  ;;  %739 = vst.msk [vmem:[%s1948_s28 + $0x90] sm:$0xff] %vm720_vm2, %v666_v29  ;;  %v669_v37 = vadd.f32 %v1595_v34, %v1943_v24  ;;  %v660_v38 = vpop.f32.mrb[3].mxu1 }
 0x102   : > { %721 = vst.msk [vmem:[%s1948_s28] sm:$0xff] %vm720_vm2, %v594_v31  ;;  %v597_v39 = vadd.f32 %v1943_v24, %v596_v36  ;;  %737 = vst.msk [vmem:[%s1948_s28 + $0x80] sm:$0xff] %vm720_vm2, %v658_v33  ;;  %v661_v40 = vadd.f32 %v1943_v24, %v660_v38 }
 0x103   : > { %724 = vst.msk [vmem:[%s1948_s28 + $0x18] sm:$0xff] %vm720_vm2, %v605_v35  ;;  %740 = vst.msk [vmem:[%s1948_s28 + $0x98] sm:$0xff] %vm720_vm2, %v669_v37 }
 0x104   : > { %722 = vst.msk [vmem:[%s1948_s28 + $0x8] sm:$0xff] %vm720_vm2, %v597_v39  ;;  %738 = vst.msk [vmem:[%s1948_s28 + $0x88] sm:$0xff] %vm720_vm2, %v661_v40 }
 0x106   : > { %v1582_v41 = vpop.f32.mrb[4].mxu0  ;;  %v1598_v42 = vpop.f32.mrb[4].mxu1 }
 0x107   : > { %v618_v43 = vadd.f32 %v1582_v41, %v1943_v24  ;;  %v609_v44 = vpop.f32.mrb[5].mxu0  ;;  %v682_v45 = vadd.f32 %v1598_v42, %v1943_v24  ;;  %v673_v46 = vpop.f32.mrb[5].mxu1 }
 0x108   : > { %v610_v47 = vadd.f32 %v1943_v24, %v609_v44  ;;  %v1583_v48 = vpop.f32.mrb[6].mxu0  ;;  %v674_v49 = vadd.f32 %v1943_v24, %v673_v46  ;;  %v1599_v50 = vpop.f32.mrb[6].mxu1  ;;  %v1979_v51 = vld [vmem:[%s1948_s28 + $0x10] sm:$0xff] }
 0x109   : > { %v1982_v52 = vld [vmem:[%s1948_s28] sm:$0xff]  ;;  %727 = vst.msk [vmem:[%s1948_s28 + $0x30] sm:$0xff] %vm720_vm2, %v618_v43  ;;  %v621_v53 = vadd.f32 %v1583_v48, %v1943_v24  ;;  %v612_v54 = vpop.f32.mrb[7].mxu0  ;;  %743 = vst.msk [vmem:[%s1948_s28 + $0xb0] sm:$0xff] %vm720_vm2, %v682_v45  ;;  %v685_v55 = vadd.f32 %v1599_v50, %v1943_v24  ;;  %v676_v56 = vpop.f32.mrb[7].mxu1  ;;  %v857_v62 = vmul.f32 %v1979_v51, %v1979_v51  ;;  %v789_v4 = vsel %vm720_vm2, %v1979_v51, 0.0 }
 0x10a   : > { %v855_v57 = vmul.f32 %v1982_v52, %v1982_v52  ;;  %v1993_v58 = vld [vmem:[%s1948_s28 + $0x18] sm:$0xff]  ;;  %725 = vst.msk [vmem:[%s1948_s28 + $0x20] sm:$0xff] %vm720_vm2, %v610_v47  ;;  %v613_v59 = vadd.f32 %v1943_v24, %v612_v54  ;;  %741 = vst.msk [vmem:[%s1948_s28 + $0xa0] sm:$0xff] %vm720_vm2, %v674_v49  ;;  %v677_v61 = vadd.f32 %v1943_v24, %v676_v56  ;;  %v786_v63 = vsel %vm720_vm2, %v1982_v52, 0.0 }
 0x10b   : > { %v2001_v60 = vld [vmem:[%s1948_s28 + $0x8] sm:$0xff]  ;;  %728 = vst.msk [vmem:[%s1948_s28 + $0x38] sm:$0xff] %vm720_vm2, %v621_v53  ;;  %744 = vst.msk [vmem:[%s1948_s28 + $0xb8] sm:$0xff] %vm720_vm2, %v685_v55  ;;  %v858_v2 = vmul.f32 %v1993_v58, %v1993_v58  ;;  %v890_v15 = vsel %vm720_vm2, %v857_v62, 0.0  ;;  %v791_v16 = vsel %vm720_vm2, %v1993_v58, 0.0 }
 0x10c   : > { %v787_v0 = vsel %vm720_vm2, %v2001_v60, 0.0  ;;  %v856_v1 = vmul.f32 %v2001_v60, %v2001_v60  ;;  %726 = vst.msk [vmem:[%s1948_s28 + $0x28] sm:$0xff] %vm720_vm2, %v613_v59  ;;  %742 = vst.msk [vmem:[%s1948_s28 + $0xa8] sm:$0xff] %vm720_vm2, %v677_v61  ;;  %v887_v5 = vsel %vm720_vm2, %v855_v57, 0.0 }
 0x10d   : > { %v788_v3 = vadd.f32 %v787_v0, %v786_v63  ;;  %v892_v22 = vsel %vm720_vm2, %v858_v2, 0.0 }
 0x10e   : > { %v888_v6 = vsel %vm720_vm2, %v856_v1, 0.0  ;;  %v1586_v7 = vpop.f32.mrb[8].mxu0  ;;  %v1602_v8 = vpop.f32.mrb[8].mxu1 }
 0x10f   : > { %v790_v9 = vadd.f32 %v789_v4, %v788_v3  ;;  %v889_v10 = vadd.f32 %v888_v6, %v887_v5  ;;  %v634_v11 = vadd.f32 %v1586_v7, %v1943_v24  ;;  %v625_v12 = vpop.f32.mrb[9].mxu0  ;;  %v698_v13 = vadd.f32 %v1602_v8, %v1943_v24  ;;  %v689_v14 = vpop.f32.mrb[9].mxu1 }
 0x110   : > { %v2032_v17 = vld [vmem:[%s1948_s28 + $0x30] sm:$0xff]  ;;  %v626_v18 = vadd.f32 %v1943_v24, %v625_v12  ;;  %v1587_v19 = vpop.f32.mrb[10].mxu0  ;;  %v690_v20 = vadd.f32 %v1943_v24, %v689_v14  ;;  %v1603_v21 = vpop.f32.mrb[10].mxu1 }
 0x111   : > { %v891_v23 = vadd.f32 %v890_v15, %v889_v10  ;;  %v2038_v25 = vld [vmem:[%s1948_s28 + $0x20] sm:$0xff]  ;;  %v792_v26 = vadd.f32 %v791_v16, %v790_v9  ;;  %731 = vst.msk [vmem:[%s1948_s28 + $0x50] sm:$0xff] %vm720_vm2, %v634_v11  ;;  %v628_v27 = vpop.f32.mrb[11].mxu0  ;;  %747 = vst.msk [vmem:[%s1948_s28 + $0xd0] sm:$0xff] %vm720_vm2, %v698_v13  ;;  %v692_v28 = vpop.f32.mrb[11].mxu1  ;;  %v637_v32 = vadd.f32 %v1587_v19, %v1943_v24  ;;  %v797_v46 = vsel %vm720_vm2, %v2032_v17, 0.0 }
 0x112   : > { %v793_v29 = vsel %vm720_vm2, %v2038_v25, 0.0  ;;  %v859_v30 = vmul.f32 %v2038_v25, %v2038_v25  ;;  %v2049_v31 = vld [vmem:[%s1948_s28 + $0x38] sm:$0xff]  ;;  %729 = vst.msk [vmem:[%s1948_s28 + $0x40] sm:$0xff] %vm720_vm2, %v626_v18  ;;  %v629_v33 = vadd.f32 %v1943_v24, %v628_v27  ;;  %745 = vst.msk [vmem:[%s1948_s28 + $0xc0] sm:$0xff] %vm720_vm2, %v690_v20  ;;  %v861_v34 = vmul.f32 %v2032_v17, %v2032_v17 }
 0x113   : > { %v794_v35 = vadd.f32 %v793_v29, %v792_v26  ;;  %v893_v36 = vadd.f32 %v892_v22, %v891_v23  ;;  %v2060_v37 = vld [vmem:[%s1948_s28 + $0x28] sm:$0xff]  ;;  %v862_v39 = vmul.f32 %v2049_v31, %v2049_v31  ;;  %732 = vst.msk [vmem:[%s1948_s28 + $0x58] sm:$0xff] %vm720_vm2, %v637_v32  ;;  %v701_v44 = vadd.f32 %v1603_v21, %v1943_v24 }
 0x114   : > { %v894_v38 = vsel %vm720_vm2, %v859_v30, 0.0  ;;  %v795_v40 = vsel %vm720_vm2, %v2060_v37, 0.0  ;;  %v860_v41 = vmul.f32 %v2060_v37, %v2060_v37  ;;  %730 = vst.msk [vmem:[%s1948_s28 + $0x48] sm:$0xff] %vm720_vm2, %v629_v33  ;;  %v693_v45 = vadd.f32 %v1943_v24, %v692_v28 }
 0x115   : > { %v895_v42 = vadd.f32 %v894_v38, %v893_v36  ;;  %v796_v43 = vadd.f32 %v795_v40, %v794_v35  ;;  %748 = vst.msk [vmem:[%s1948_s28 + $0xd8] sm:$0xff] %vm720_vm2, %v701_v44  ;;  %v898_v59 = vsel %vm720_vm2, %v861_v34, 0.0  ;;  %v799_v61 = vsel %vm720_vm2, %v2049_v31, 0.0 }
 0x116   : > { %v896_v47 = vsel %vm720_vm2, %v860_v41, 0.0  ;;  %v1590_v48 = vpop.f32.mrb[12].mxu0  ;;  %v1606_v49 = vpop.f32.mrb[12].mxu1  ;;  %746 = vst.msk [vmem:[%s1948_s28 + $0xc8] sm:$0xff] %vm720_vm2, %v693_v45  ;;  %v900_v2 = vsel %vm720_vm2, %v862_v39, 0.0 }
 0x117   : > { %v798_v50 = vadd.f32 %v797_v46, %v796_v43  ;;  %v897_v53 = vadd.f32 %v896_v47, %v895_v42  ;;  %v650_v54 = vadd.f32 %v1590_v48, %v1943_v24  ;;  %v641_v55 = vpop.f32.mrb[13].mxu0  ;;  %v714_v56 = vadd.f32 %v1606_v49, %v1943_v24  ;;  %v705_v57 = vpop.f32.mrb[13].mxu1  ;;  %v2160_v48 = vld [vmem:[%s1948_s28 + $0x80] sm:$0xff] }
 0x118   : > { %v642_v62 = vadd.f32 %v1943_v24, %v641_v55  ;;  %v1591_v63 = vpop.f32.mrb[14].mxu0  ;;  %v706_v0 = vadd.f32 %v1943_v24, %v705_v57  ;;  %v1607_v1 = vpop.f32.mrb[14].mxu1  ;;  %v2091_v4 = vld [vmem:[%s1948_s28 + $0x50] sm:$0xff] }
 0x119   : > { %v899_v3 = vadd.f32 %v898_v59, %v897_v53  ;;  %v2094_v5 = vld [vmem:[%s1948_s28 + $0x40] sm:$0xff]  ;;  %v800_v6 = vadd.f32 %v799_v61, %v798_v50  ;;  %735 = vst.msk [vmem:[%s1948_s28 + $0x70] sm:$0xff] %vm720_vm2, %v650_v54  ;;  %v644_v7 = vpop.f32.mrb[15].mxu0  ;;  %751 = vst.msk [vmem:[%s1948_s28 + $0xf0] sm:$0xff] %vm720_vm2, %v714_v56  ;;  %v708_v8 = vpop.f32.mrb[15].mxu1  ;;  %v653_v11 = vadd.f32 %v1591_v63, %v1943_v24  ;;  %v805_v28 = vsel %vm720_vm2, %v2091_v4, 0.0 }
 0x11a   : > { %v801_v9 = vsel %vm720_vm2, %v2094_v5, 0.0  ;;  %v863_v10 = vmul.f32 %v2094_v5, %v2094_v5  ;;  %733 = vst.msk [vmem:[%s1948_s28 + $0x60] sm:$0xff] %vm720_vm2, %v642_v62  ;;  %v645_v12 = vadd.f32 %v1943_v24, %v644_v7  ;;  %749 = vst.msk [vmem:[%s1948_s28 + $0xe0] sm:$0xff] %vm720_vm2, %v706_v0  ;;  %v717_v16 = vadd.f32 %v1607_v1, %v1943_v24  ;;  %v2118_v20 = vld [vmem:[%s1948_s28 + $0x58] sm:$0xff]  ;;  %v2176_v63 = vld [vmem:[%s1948_s28 + $0x88] sm:$0xff] }
 0x11b   : > { %v802_v13 = vadd.f32 %v801_v9, %v800_v6  ;;  %v901_v14 = vadd.f32 %v900_v2, %v899_v3  ;;  %v2111_v15 = vld [vmem:[%s1948_s28 + $0x48] sm:$0xff]  ;;  %v865_v18 = vmul.f32 %v2091_v4, %v2091_v4  ;;  %736 = vst.msk [vmem:[%s1948_s28 + $0x78] sm:$0xff] %vm720_vm2, %v653_v11  ;;  %v709_v27 = vadd.f32 %v1943_v24, %v708_v8  ;;  %v2184_v6 = vld [vmem:[%s1948_s28 + $0x90] sm:$0xff] }
 0x11c   : > { %v902_v19 = vsel %vm720_vm2, %v863_v10, 0.0  ;;  %v803_v21 = vsel %vm720_vm2, %v2111_v15, 0.0  ;;  %734 = vst.msk [vmem:[%s1948_s28 + $0x68] sm:$0xff] %vm720_vm2, %v645_v12  ;;  %v864_v26 = vmul.f32 %v2111_v15, %v2111_v15  ;;  %752 = vst.msk [vmem:[%s1948_s28 + $0xf8] sm:$0xff] %vm720_vm2, %v717_v16  ;;  %v866_v29 = vmul.f32 %v2118_v20, %v2118_v20  ;;  %v2191_v12 = vld [vmem:[%s1948_s28 + $0x98] sm:$0xff] }
 0x11d   : > { %v903_v22 = vadd.f32 %v902_v19, %v901_v14  ;;  %v804_v23 = vadd.f32 %v803_v21, %v802_v13  ;;  %750 = vst.msk [vmem:[%s1948_s28 + $0xe8] sm:$0xff] %vm720_vm2, %v709_v27  ;;  %v807_v33 = vsel %vm720_vm2, %v2118_v20, 0.0  ;;  %v906_v24 = vsel %vm720_vm2, %v865_v18, 0.0  ;;  %v2194_v13 = vld [vmem:[%s1948_s28 + $0xa0] sm:$0xff] }
 0x11e   : > { %v904_v32 = vsel %vm720_vm2, %v864_v26, 0.0  ;;  %v908_v42 = vsel %vm720_vm2, %v866_v29, 0.0  ;;  %v871_v61 = vmul.f32 %v2160_v48, %v2160_v48  ;;  %v817_v3 = vsel %vm720_vm2, %v2160_v48, 0.0  ;;  %v2208_v29 = vld [vmem:[%s1948_s28 + $0xa8] sm:$0xff] }
 0x11f   : > { %v806_v30 = vadd.f32 %v805_v28, %v804_v23  ;;  %v905_v34 = vadd.f32 %v904_v32, %v903_v22  ;;  %v872_v10 = vmul.f32 %v2176_v63, %v2176_v63  ;;  %v819_v18 = vsel %vm720_vm2, %v2176_v63, 0.0 }
 0x120   : > { %v2145_v39 = vld [vmem:[%s1948_s28 + $0x70] sm:$0xff]  ;;  %v918_v11 = vsel %vm720_vm2, %v871_v61, 0.0  ;;  %v873_v19 = vmul.f32 %v2184_v6, %v2184_v6  ;;  %v821_v23 = vsel %vm720_vm2, %v2184_v6, 0.0  ;;  %v874_v26 = vmul.f32 %v2191_v12, %v2191_v12 }
 0x121   : > { %v2142_v35 = vld [vmem:[%s1948_s28 + $0x60] sm:$0xff]  ;;  %v808_v36 = vadd.f32 %v807_v33, %v806_v30  ;;  %v907_v38 = vadd.f32 %v906_v24, %v905_v34  ;;  %v869_v49 = vmul.f32 %v2145_v39, %v2145_v39  ;;  %v813_v56 = vsel %vm720_vm2, %v2145_v39, 0.0 }
 0x122   : > { %v809_v40 = vsel %vm720_vm2, %v2142_v35, 0.0  ;;  %v867_v41 = vmul.f32 %v2142_v35, %v2142_v35  ;;  %v2157_v47 = vld [vmem:[%s1948_s28 + $0x78] sm:$0xff]  ;;  %v875_v27 = vmul.f32 %v2194_v13, %v2194_v13  ;;  %v920_v28 = vsel %vm720_vm2, %v872_v10, 0.0 }
 0x123   : > { %v810_v43 = vadd.f32 %v809_v40, %v808_v36  ;;  %v2153_v44 = vld [vmem:[%s1948_s28 + $0x68] sm:$0xff]  ;;  %v909_v45 = vadd.f32 %v908_v42, %v907_v38  ;;  %v870_v57 = vmul.f32 %v2157_v47, %v2157_v47  ;;  %v914_v1 = vsel %vm720_vm2, %v869_v49, 0.0  ;;  %v2216_v36 = vld [vmem:[%s1948_s28 + $0xb0] sm:$0xff] }
 0x124   : > { %v910_v46 = vsel %vm720_vm2, %v867_v41, 0.0  ;;  %v811_v50 = vsel %vm720_vm2, %v2153_v44, 0.0  ;;  %v868_v53 = vmul.f32 %v2153_v44, %v2153_v44  ;;  %v815_v2 = vsel %vm720_vm2, %v2157_v47, 0.0 }
 0x125   : > { %v911_v54 = vadd.f32 %v910_v46, %v909_v45  ;;  %v812_v55 = vadd.f32 %v811_v50, %v810_v43  ;;  %v916_v9 = vsel %vm720_vm2, %v870_v57, 0.0  ;;  %v823_v33 = vsel %vm720_vm2, %v2191_v12, 0.0  ;;  %v2223_v45 = vld [vmem:[%s1948_s28 + $0xb8] sm:$0xff]  ;;  %v2226_v46 = vld [vmem:[%s1948_s28 + $0xc0] sm:$0xff] }
 0x126   : > { %v912_v59 = vsel %vm720_vm2, %v868_v53, 0.0  ;;  %v825_v34 = vsel %vm720_vm2, %v2194_v13, 0.0  ;;  %v922_v24 = vsel %vm720_vm2, %v873_v19, 0.0  ;;  %v876_v41 = vmul.f32 %v2208_v29, %v2208_v29  ;;  %v2255_v19 = vld [vmem:[%s1948_s28 + $0xd8] sm:$0xff] }
 0x127   : > { %v913_v62 = vadd.f32 %v912_v59, %v911_v54  ;;  %v814_v0 = vadd.f32 %v813_v56, %v812_v55  ;;  %v924_v42 = vsel %vm720_vm2, %v874_v26, 0.0  ;;  %v926_v43 = vsel %vm720_vm2, %v875_v27, 0.0 }
 0x128   : > { %v827_v53 = vsel %vm720_vm2, %v2208_v29, 0.0  ;;  %v877_v54 = vmul.f32 %v2216_v36, %v2216_v36  ;;  %v829_v57 = vsel %vm720_vm2, %v2216_v36, 0.0  ;;  %v878_v59 = vmul.f32 %v2223_v45, %v2223_v45 }
 0x129   : > { %v816_v7 = vadd.f32 %v815_v2, %v814_v0  ;;  %v915_v8 = vadd.f32 %v914_v1, %v913_v62  ;;  %v879_v61 = vmul.f32 %v2226_v46, %v2226_v46  ;;  %v928_v62 = vsel %vm720_vm2, %v876_v41, 0.0  ;;  %v2240_v0 = vld [vmem:[%s1948_s28 + $0xc8] sm:$0xff] }
 0x12a   : > { %v835_v26 = vsel %vm720_vm2, %v2240_v0, 0.0 }
 0x12b   : > { %v818_v14 = vadd.f32 %v817_v3, %v816_v7  ;;  %v917_v16 = vadd.f32 %v916_v9, %v915_v8  ;;  %v831_v3 = vsel %vm720_vm2, %v2223_v45, 0.0  ;;  %v833_v7 = vsel %vm720_vm2, %v2226_v46, 0.0  ;;  %v2248_v9 = vld [vmem:[%s1948_s28 + $0xd0] sm:$0xff] }
 0x12c   : > { %v930_v8 = vsel %vm720_vm2, %v877_v54, 0.0  ;;  %v881_v27 = vmul.f32 %v2248_v9, %v2248_v9 }
 0x12d   : > { %v820_v21 = vadd.f32 %v819_v18, %v818_v14  ;;  %v919_v22 = vadd.f32 %v918_v11, %v917_v16  ;;  %v880_v14 = vmul.f32 %v2240_v0, %v2240_v0  ;;  %v932_v16 = vsel %vm720_vm2, %v878_v59, 0.0  ;;  %v2287_v59 = vld [vmem:[%s1948_s28 + $0xf8] sm:$0xff] }
 0x12e   : > { %v934_v18 = vsel %vm720_vm2, %v879_v61, 0.0 }
 0x12f   : > { %v822_v30 = vadd.f32 %v821_v23, %v820_v21  ;;  %v921_v32 = vadd.f32 %v920_v28, %v919_v22  ;;  %v2258_v21 = vld [vmem:[%s1948_s28 + $0xe0] sm:$0xff] }
 0x131   : > { %v824_v38 = vadd.f32 %v823_v33, %v822_v30  ;;  %v923_v40 = vadd.f32 %v922_v24, %v921_v32  ;;  %v837_v32 = vsel %vm720_vm2, %v2248_v9, 0.0  ;;  %v882_v33 = vmul.f32 %v2255_v19, %v2255_v19 }
 0x132   : > { %v936_v24 = vsel %vm720_vm2, %v880_v14, 0.0 }
 0x133   : > { %v826_v49 = vadd.f32 %v825_v34, %v824_v38  ;;  %v925_v50 = vadd.f32 %v924_v42, %v923_v40  ;;  %v883_v34 = vmul.f32 %v2258_v21, %v2258_v21  ;;  %v2272_v38 = vld [vmem:[%s1948_s28 + $0xe8] sm:$0xff]  ;;  %v839_v42 = vsel %vm720_vm2, %v2255_v19, 0.0 }
 0x135   : > { %v828_v55 = vadd.f32 %v827_v53, %v826_v49  ;;  %v927_v56 = vadd.f32 %v926_v43, %v925_v50  ;;  %v841_v43 = vsel %vm720_vm2, %v2258_v21, 0.0  ;;  %v938_v49 = vsel %vm720_vm2, %v881_v27, 0.0  ;;  %v2280_v50 = vld [vmem:[%s1948_s28 + $0xf0] sm:$0xff] }
 0x137   : > { %v830_v1 = vadd.f32 %v829_v57, %v828_v55  ;;  %v929_v2 = vadd.f32 %v928_v62, %v927_v56  ;;  %v884_v55 = vmul.f32 %v2272_v38, %v2272_v38  ;;  %v940_v56 = vsel %vm720_vm2, %v882_v33, 0.0 }
 0x138   : > { %v942_v57 = vsel %vm720_vm2, %v883_v34, 0.0 }
 0x139   : > { %v832_v10 = vadd.f32 %v831_v3, %v830_v1  ;;  %v931_v11 = vadd.f32 %v930_v8, %v929_v2  ;;  %v843_v1 = vsel %vm720_vm2, %v2272_v38, 0.0  ;;  %v885_v2 = vmul.f32 %v2280_v50, %v2280_v50 }
 0x13a   : > { %v845_v8 = vsel %vm720_vm2, %v2280_v50, 0.0 }
 0x13b   : > { %v834_v22 = vadd.f32 %v833_v7, %v832_v10  ;;  %v933_v23 = vadd.f32 %v932_v16, %v931_v11  ;;  %v886_v10 = vmul.f32 %v2287_v59, %v2287_v59  ;;  %v944_v11 = vsel %vm720_vm2, %v884_v55, 0.0 }
 0x13d   : > { %v836_v28 = vadd.f32 %v835_v26, %v834_v22  ;;  %v935_v30 = vadd.f32 %v934_v18, %v933_v23  ;;  %v847_v18 = vsel %vm720_vm2, %v2287_v59, 0.0  ;;  %v946_v22 = vsel %vm720_vm2, %v885_v2, 0.0 }
 0x13e   : > { %v948_v27 = vsel %vm720_vm2, %v886_v10, 0.0 }
 0x13f   : > { %v838_v40 = vadd.f32 %v837_v32, %v836_v28  ;;  %v937_v41 = vadd.f32 %v936_v24, %v935_v30 }
 0x141   : > { %v840_v53 = vadd.f32 %v839_v42, %v838_v40  ;;  %v939_v54 = vadd.f32 %v938_v49, %v937_v41  ;;  %v753_v49 = vld [vmem:[%s2681_s5] sm:$0xff] }
 0x143   : > { %v842_v61 = vadd.f32 %v841_v43, %v840_v53  ;;  %v941_v62 = vadd.f32 %v940_v56, %v939_v54 }
 0x145   : > { %v844_v3 = vadd.f32 %v843_v1, %v842_v61  ;;  %v943_v7 = vadd.f32 %v942_v57, %v941_v62 }
 0x147   : > { %v846_v14 = vadd.f32 %v845_v8, %v844_v3  ;;  %v945_v16 = vadd.f32 %v944_v11, %v943_v7 }
 0x149   : > { %v848_v23 = vadd.f32 %v847_v18, %v846_v14  ;;  %v947_v26 = vadd.f32 %v946_v22, %v945_v16 }
 0x14b   : > { %v849_v28 = vrot.slane %v848_v23, 4  ;;  %v949_v30 = vadd.f32 %v948_v27, %v947_v26 }
 0x14d   : > { %v850_v32 = vadd.f32 %v849_v28, %v848_v23  ;;  %v950_v33 = vrot.slane %v949_v30, 4 }
 0x14f   : > { %v851_v34 = vrot.slane %v850_v32, 2  ;;  %v951_v24 = vadd.f32 %v950_v33, %v949_v30 }
 0x151   : > { %v852_v40 = vadd.f32 %v851_v34, %v850_v32  ;;  %v952_v41 = vrot.slane %v951_v24, 2 }
 0x153   : > { %v853_v42 = vrot.slane %v852_v40, 1  ;;  %v953_v43 = vadd.f32 %v952_v41, %v951_v24 }
 0x155   : > { %v854_v53 = vadd.f32 %v853_v42, %v852_v40  ;;  %v954_v54 = vrot.slane %v953_v43, 1  ;;  %v986_v42 = vld [vmem:[%s2679_s3] sm:$0x1] }
 0x157   : > { %v956_v55 = vmul.f32 %v854_v53, %v753_v49  ;;  %v955_v56 = vadd.f32 %v954_v54, %v953_v43  ;;  %v991_v53 = vlaneseq }
 0x159   : > { %v957_v57 = vsel %vm720_vm2, %v956_v55, 0.0  ;;  %v961_v61 = vmul.f32 %v955_v56, %v753_v49 }
 0x15a   : > { %958 = vadd.xlane.f32.xlu0 %v957_v57  ;;  %v988_v57 = vld [vmem:[%s2680_s4] sm:$0x1] }
 0x15b   : > { %v962_v62 = vsel %vm720_vm2, %v961_v61, 0.0 }
 0x15e   : > { %963 = vadd.xlane.f32.xlu0 %v962_v62 }
 0x1e7   : > { %v959_v1 = vpop.xlane.xlu0 %958 }
 0x1e8   : > { %v960_v2 = vmul.f32 0.001953125, %v959_v1 }
 0x1ea   : > { %v966_v7 = vmul.f32 %v960_v2, %v960_v2  ;;  %v970_v14 = vmul.f32 %v960_v2, %v753_v49 }
 0x1eb   : > { %v964_v3 = vpop.xlane.xlu0 %963 }
 0x1ec   : > { %v965_v8 = vmul.f32 0.001953125, %v964_v3  ;;  %v971_v16 = vsel %vm720_vm2, %v970_v14, 0.0 }
 0x1ed   : > { %v972_v22 = vrot.slane %v971_v16, 4 }
 0x1ee   : > { %v967_v10 = vsub.f32 %v965_v8, %v966_v7 }
 0x1ef   : > { %v973_v27 = vadd.f32 %v972_v22, %v971_v16 }
 0x1f0   : > { %v968_v11 = vadd.f32 1e-05, %v967_v10 }
 0x1f1   : > { %v974_v32 = vrot.slane %v973_v27, 2 }
 0x1f2   : > { %1671 = vrsqrt.f32 %v968_v11 }
 0x1f3   : > { %v975_v24 = vadd.f32 %v974_v32, %v973_v27 }
 0x1f5   : > { %v976_v43 = vrot.slane %v975_v24, 1 }
 0x1f7   : > { %v977_v55 = vadd.f32 %v976_v43, %v975_v24 }
 0x1fc   : > { %v1672_v18 = vpop.eup %1671 }
 0x1fd   : > { %v978_v23 = vmul.f32 %v1672_v18, %v753_v49  ;;  %v992_v49 = vshrl.u32 %v991_v53, 7 }
 0x1ff   : > { %v979_v26 = vsel %vm720_vm2, %v978_v23, 0.0  ;;  %v993_v61 = vsub.s32 0, %v992_v49 }
 0x200   : > { %v980_v28 = vrot.slane %v979_v26, 4 }
 0x202   : > { %v981_v30 = vadd.f32 %v980_v28, %v979_v26 }
 0x204   : > { %v982_v33 = vrot.slane %v981_v30, 2 }
 0x206   : > { %v983_v34 = vadd.f32 %v982_v33, %v981_v30 }
 0x208   : > { %v984_v40 = vrot.slane %v983_v34, 1 }
 0x20a   : > { %v985_v41 = vadd.f32 %v984_v40, %v983_v34 }
 0x20c   : > { %v987_v54 = vmul.f32 %v986_v42, %v985_v41 }
 0x20e   : > { %v989_v56 = vmul.f32 %v987_v54, %v977_v55  ;;  %v2315_v1 = vrot.slane %v987_v54, %v993_v61 }
 0x210   : > { %v990_v62 = vsub.f32 %v988_v57, %v989_v56  ;;  %v995_v3 = vmul.f32 %v2315_v1, %v1982_v52  ;;  %v996_v7 = vmul.f32 %v2315_v1, %v2001_v60  ;;  %v997_v8 = vmul.f32 %v2315_v1, %v1979_v51 }
 0x211   : > { %v998_v10 = vmul.f32 %v2315_v1, %v1993_v58  ;;  %v999_v11 = vmul.f32 %v2315_v1, %v2038_v25  ;;  %v1000_v60 = vmul.f32 %v2315_v1, %v2060_v37  ;;  %v1001_v58 = vmul.f32 %v2315_v1, %v2032_v17 }
 0x212   : > { %v2317_v2 = vrot.slane %v990_v62, %v993_v61  ;;  %v1002_v18 = vmul.f32 %v2315_v1, %v2049_v31  ;;  %v1003_v22 = vmul.f32 %v2315_v1, %v2094_v5  ;;  %v1004_v28 = vmul.f32 %v2315_v1, %v2111_v15 }
 0x213   : > { %v1005_v30 = vmul.f32 %v2315_v1, %v2091_v4  ;;  %v1006_v34 = vmul.f32 %v2315_v1, %v2118_v20  ;;  %v1007_v40 = vmul.f32 %v2315_v1, %v2142_v35  ;;  %v1008_v42 = vmul.f32 %v2315_v1, %v2153_v44 }
 0x214   : > { %v2330_v14 = vadd.f32 %v2317_v2, %v995_v3  ;;  %v2333_v16 = vadd.f32 %v2317_v2, %v996_v7  ;;  %v2336_v52 = vadd.f32 %v2317_v2, %v997_v8  ;;  %v2341_v51 = vadd.f32 %v2317_v2, %v998_v10 }
 0x215   : > { %v2346_v25 = vadd.f32 %v2317_v2, %v999_v11  ;;  %v2353_v23 = vadd.f32 %v2317_v2, %v1000_v60  ;;  %v2356_v37 = vadd.f32 %v2317_v2, %v1001_v58  ;;  %v2364_v31 = vadd.f32 %v2317_v2, %v1002_v18 }
 0x216   : > { %v1503_v26 = vmul.f32 -1.442695, %v2330_v14  ;;  %v1504_v27 = vmul.f32 -1.442695, %v2333_v16  ;;  %v1505_v17 = vmul.f32 -1.442695, %v2336_v52  ;;  %v2370_v32 = vadd.f32 %v2317_v2, %v1003_v22 }
 0x217   : > { %v1506_v5 = vmul.f32 -1.442695, %v2341_v51  ;;  %v1507_v33 = vmul.f32 -1.442695, %v2346_v25  ;;  %v2376_v24 = vadd.f32 %v2317_v2, %v1004_v28  ;;  %v1508_v15 = vmul.f32 -1.442695, %v2353_v23 }
 0x218   : > { %1673 = vpow2.f32 %v1503_v26  ;;  %v2382_v4 = vadd.f32 %v2317_v2, %v1005_v30  ;;  %v1509_v41 = vmul.f32 -1.442695, %v2356_v37  ;;  %v2388_v20 = vadd.f32 %v2317_v2, %v1006_v34 }
 0x219   : > { %1675 = vpow2.f32 %v1504_v27  ;;  %v1510_v43 = vmul.f32 -1.442695, %v2364_v31  ;;  %v1009_v53 = vmul.f32 %v2315_v1, %v2145_v39  ;;  %v2394_v35 = vadd.f32 %v2317_v2, %v1007_v40 }
 0x21a   : > { %1677 = vpow2.f32 %v1505_v17  ;;  %v1511_v54 = vmul.f32 -1.442695, %v2370_v32  ;;  %v1010_v55 = vmul.f32 %v2315_v1, %v2157_v47  ;;  %v2400_v44 = vadd.f32 %v2317_v2, %v1008_v42 }
 0x21b   : > { %1679 = vpow2.f32 %v1506_v5  ;;  %v1512_v49 = vmul.f32 -1.442695, %v2376_v24  ;;  %v1011_v56 = vmul.f32 %v2315_v1, %v2160_v48  ;;  %v2406_v39 = vadd.f32 %v2317_v2, %v1009_v53 }
 0x21c   : > { %1681 = vpow2.f32 %v1507_v33  ;;  %v1513_v57 = vmul.f32 -1.442695, %v2382_v4  ;;  %v1012_v61 = vmul.f32 %v2315_v1, %v2176_v63  ;;  %v2412_v47 = vadd.f32 %v2317_v2, %v1010_v55 }
 0x21d   : > { %1683 = vpow2.f32 %v1508_v15  ;;  %v1514_v62 = vmul.f32 -1.442695, %v2388_v20  ;;  %v1013_v3 = vmul.f32 %v2315_v1, %v2184_v6  ;;  %v2418_v48 = vadd.f32 %v2317_v2, %v1011_v56 }
 0x21e   : > { %1685 = vpow2.f32 %v1509_v41  ;;  %v1515_v7 = vmul.f32 -1.442695, %v2394_v35  ;;  %v1014_v8 = vmul.f32 %v2315_v1, %v2191_v12  ;;  %v2424_v63 = vadd.f32 %v2317_v2, %v1012_v61 }
 0x21f   : > { %1687 = vpow2.f32 %v1510_v43  ;;  %v1516_v10 = vmul.f32 -1.442695, %v2400_v44  ;;  %v1015_v6 = vmul.f32 %v2315_v1, %v2194_v13  ;;  %v2432_v60 = vadd.f32 %v2317_v2, %v1013_v3 }
 0x220   : > { %1689 = vpow2.f32 %v1511_v54  ;;  %v1517_v58 = vmul.f32 -1.442695, %v2406_v39  ;;  %v1016_v12 = vmul.f32 %v2315_v1, %v2208_v29  ;;  %v2440_v22 = vadd.f32 %v2317_v2, %v1014_v8 }
 0x221   : > { %1691 = vpow2.f32 %v1512_v49  ;;  %v1518_v26 = vmul.f32 -1.442695, %v2412_v47  ;;  %v1017_v13 = vmul.f32 %v2315_v1, %v2216_v36  ;;  %v2448_v17 = vadd.f32 %v2317_v2, %v1015_v6 }
 0x222   : > { %v2427_v11 = vpop.eup %1673  ;;  %1693 = vpow2.f32 %v1513_v57  ;;  %v1519_v28 = vmul.f32 -1.442695, %v2418_v48  ;;  %v1018_v29 = vmul.f32 %v2315_v1, %v2223_v45  ;;  %v2456_v30 = vadd.f32 %v2317_v2, %v1016_v12 }
 0x223   : > { %v2435_v18 = vpop.eup %1675  ;;  %1695 = vpow2.f32 %v1514_v62  ;;  %v1520_v33 = vmul.f32 -1.442695, %v2424_v63  ;;  %v1019_v36 = vmul.f32 %v2315_v1, %v2226_v46  ;;  %v2464_v15 = vadd.f32 %v2317_v2, %v1017_v13 }
 0x224   : > { %v2443_v27 = vpop.eup %1677  ;;  %1697 = vpow2.f32 %v1515_v7  ;;  %v1521_v40 = vmul.f32 -1.442695, %v2432_v60  ;;  %v1020_v45 = vmul.f32 %v2315_v1, %v2240_v0  ;;  %v2472_v42 = vadd.f32 %v2317_v2, %v1018_v29 }
 0x225   : > { %v2451_v5 = vpop.eup %1679  ;;  %1699 = vpow2.f32 %v1516_v10  ;;  %v1522_v43 = vmul.f32 -1.442695, %v2440_v22  ;;  %v1021_v46 = vmul.f32 %v2315_v1, %v2248_v9  ;;  %v2480_v54 = vadd.f32 %v2317_v2, %v1019_v36 }
 0x226   : > { %v2459_v34 = vpop.eup %1681  ;;  %1701 = vpow2.f32 %v1517_v58  ;;  %v1523_v55 = vmul.f32 -1.442695, %v2448_v17  ;;  %v1022_v0 = vmul.f32 %v2315_v1, %v2255_v19  ;;  %v2488_v56 = vadd.f32 %v2317_v2, %v1020_v45 }
 0x227   : > { %v2467_v41 = vpop.eup %1683  ;;  %1703 = vpow2.f32 %v1518_v26  ;;  %v1524_v57 = vmul.f32 -1.442695, %v2456_v30  ;;  %v1023_v9 = vmul.f32 %v2315_v1, %v2258_v21  ;;  %v2496_v62 = vadd.f32 %v2317_v2, %v1021_v46 }
 0x228   : > { %v2475_v53 = vpop.eup %1685  ;;  %1705 = vpow2.f32 %v1519_v28  ;;  %v1525_v3 = vmul.f32 -1.442695, %v2464_v15  ;;  %v1024_v19 = vmul.f32 %v2315_v1, %v2272_v38  ;;  %v2502_v8 = vadd.f32 %v2317_v2, %v1022_v0 }
 0x229   : > { %v2483_v49 = vpop.eup %1687  ;;  %1707 = vpow2.f32 %v1520_v33  ;;  %v1526_v10 = vmul.f32 -1.442695, %v2472_v42  ;;  %v1025_v21 = vmul.f32 %v2315_v1, %v2280_v50  ;;  %v2508_v58 = vadd.f32 %v2317_v2, %v1023_v9 }
 0x22a   : > { %v2491_v61 = vpop.eup %1689  ;;  %1709 = vpow2.f32 %v1521_v40  ;;  %v1527_v12 = vmul.f32 -1.442695, %v2480_v54  ;;  %v1026_v38 = vmul.f32 %v2315_v1, %v2287_v59  ;;  %v2514_v13 = vadd.f32 %v2317_v2, %v1024_v19 }
 0x22b   : > { %v1692_v7 = vpop.eup %1691  ;;  %1711 = vpow2.f32 %v1522_v43  ;;  %v1528_v28 = vmul.f32 -1.442695, %v2488_v56  ;;  %v2518_v33 = vadd.f32 %v2317_v2, %v1025_v21  ;;  %v1529_v50 = vmul.f32 -1.442695, %v2496_v62 }
 0x22c   : > { %v1694_v6 = vpop.eup %1693  ;;  %1713 = vpow2.f32 %v1523_v55  ;;  %v2522_v40 = vadd.f32 %v2317_v2, %v1026_v38  ;;  %v1530_v59 = vmul.f32 -1.442695, %v2502_v8  ;;  %v1531_v45 = vmul.f32 -1.442695, %v2508_v58 }
 0x22d   : > { %v1696_v26 = vpop.eup %1695  ;;  %1715 = vpow2.f32 %v1524_v57  ;;  %2685 = vst [vmem:[#allocation2_spill] sm:$0xff] %v2518_v33  ;;  %v1532_v46 = vmul.f32 -1.442695, %v2514_v13  ;;  %v1533_v0 = vmul.f32 -1.442695, %v2518_v33 }
 0x22e   : > { %v1698_v29 = vpop.eup %1697  ;;  %1717 = vpow2.f32 %v1525_v3  ;;  %2686 = vst [vmem:[#allocation3_spill] sm:$0xff] %v2522_v40  ;;  %v1534_v2 = vmul.f32 -1.442695, %v2522_v40  ;;  %v1161_v3 = vadd.f32 1.0, %v2427_v11  ;;  %v1166_v11 = vadd.f32 1.0, %v2467_v41 }
 0x22f   : > { %v1700_v36 = vpop.eup %1699  ;;  %1719 = vpow2.f32 %v1526_v10  ;;  %v1162_v10 = vadd.f32 1.0, %v2435_v18 }
 0x230   : > { %v1702_v1 = vpop.eup %1701  ;;  %1721 = vpow2.f32 %v1527_v12  ;;  %v1163_v12 = vadd.f32 1.0, %v2443_v27 }
 0x231   : > { %v1704_v43 = vpop.eup %1703  ;;  %1723 = vpow2.f32 %v1528_v28  ;;  %v1164_v28 = vadd.f32 1.0, %v2451_v5 }
 0x232   : > { %v1706_v55 = vpop.eup %1705  ;;  %1725 = vpow2.f32 %v1529_v50  ;;  %v1176_v33 = vadd.f32 1.0, %v1704_v43 }
 0x233   : > { %v1708_v57 = vpop.eup %1707  ;;  %1727 = vpow2.f32 %v1530_v59  ;;  %v1165_v59 = vadd.f32 1.0, %v2459_v34  ;;  %v1169_v34 = vadd.f32 1.0, %v2491_v61  ;;  %v1174_v61 = vadd.f32 1.0, %v1700_v36 }
 0x234   : > { %v1710_v9 = vpop.eup %1709  ;;  %1729 = vpow2.f32 %v1531_v45 }
 0x235   : > { %v1712_v19 = vpop.eup %1711  ;;  %1731 = vpow2.f32 %v1532_v46  ;;  %v1167_v46 = vadd.f32 1.0, %v2475_v53  ;;  %v1179_v43 = vadd.f32 1.0, %v1710_v9 }
 0x236   : > { %v1714_v21 = vpop.eup %1713  ;;  %1733 = vpow2.f32 %v1533_v0  ;;  %v1168_v0 = vadd.f32 1.0, %v2483_v49  ;;  %v1173_v49 = vadd.f32 1.0, %v1698_v29 }
 0x237   : > { %v2532_v38 = vpop.eup %1715  ;;  %1735 = vpow2.f32 %v1534_v2 }
 0x238   : > { %v2535_v50 = vpop.eup %1717  ;;  %1737 = vrcp.f32 %v1161_v3  ;;  %v1170_v3 = vadd.f32 1.0, %v1692_v7  ;;  %v1175_v7 = vadd.f32 1.0, %v1702_v1  ;;  %v1182_v9 = vadd.f32 1.0, %v2532_v38 }
 0x239   : > { %v2538_v45 = vpop.eup %1719  ;;  %1739 = vrcp.f32 %v1162_v10  ;;  %v1171_v10 = vadd.f32 1.0, %v1694_v6 }
 0x23a   : > { %v2541_v18 = vpop.eup %1721  ;;  %1741 = vrcp.f32 %v1163_v12  ;;  %v1172_v12 = vadd.f32 1.0, %v1696_v26 }
 0x23b   : > { %v2544_v27 = vpop.eup %1723  ;;  %1743 = vrcp.f32 %v1164_v28 }
 0x23c   : > { %v2547_v5 = vpop.eup %1725  ;;  %1745 = vrcp.f32 %v1165_v59 }
 0x23d   : > { %v2550_v2 = vpop.eup %1727  ;;  %1747 = vrcp.f32 %v1166_v11 }
 0x23e   : > { %v2552_v41 = vpop.eup %1729  ;;  %1749 = vrcp.f32 %v1167_v46  ;;  %v1177_v46 = vadd.f32 1.0, %v1706_v55  ;;  %v1180_v55 = vadd.f32 1.0, %v1712_v19 }
 0x23f   : > { %v2554_v53 = vpop.eup %1731  ;;  %1751 = vrcp.f32 %v1168_v0 }
 0x240   : > { %v2556_v40 = vpop.eup %1733  ;;  %1753 = vrcp.f32 %v1169_v34  ;;  %v1178_v34 = vadd.f32 1.0, %v1708_v57  ;;  %v1181_v57 = vadd.f32 1.0, %v1714_v21 }
 0x241   : > { %v2558_v28 = vpop.eup %1735  ;;  %1755 = vrcp.f32 %v1170_v3 }
 0x242   : > { %v1738_v59 = vpop.eup %1737  ;;  %1757 = vrcp.f32 %v1171_v10 }
 0x243   : > { %v1740_v11 = vpop.eup %1739  ;;  %1759 = vrcp.f32 %v1172_v12  ;;  %v1257_v6 = vmul.f32 %v1738_v59, %v2330_v14  ;;  %v1184_v12 = vadd.f32 1.0, %v2538_v45  ;;  %v1187_v59 = vadd.f32 1.0, %v2547_v5 }
 0x244   : > { %v1742_v26 = vpop.eup %1741  ;;  %1761 = vrcp.f32 %v1173_v49  ;;  %v1258_v29 = vmul.f32 %v1740_v11, %v2333_v16  ;;  %v1185_v49 = vadd.f32 1.0, %v2541_v18  ;;  %v1189_v11 = vadd.f32 1.0, %v2552_v41 }
 0x245   : > { %v1744_v0 = vpop.eup %1743  ;;  %1763 = vrcp.f32 %v1174_v61  ;;  %v1259_v36 = vmul.f32 %v1742_v26, %v2336_v52  ;;  %1289 = vst.msk [vmem:[%s1948_s28] sm:$0xff] %vm720_vm2, %v1257_v6  ;;  %v1186_v61 = vadd.f32 1.0, %v2544_v27  ;;  %v1190_v6 = vadd.f32 1.0, %v2554_v53 }
 0x246   : > { %v1746_v1 = vpop.eup %1745  ;;  %1765 = vrcp.f32 %v1175_v7  ;;  %v1260_v3 = vmul.f32 %v1744_v0, %v2341_v51  ;;  %1290 = vst.msk [vmem:[%s1948_s28 + $0x8] sm:$0xff] %vm720_vm2, %v1258_v29  ;;  %v1188_v7 = vadd.f32 1.0, %v2550_v2  ;;  %v1191_v26 = vadd.f32 1.0, %v2556_v40 }
 0x247   : > { %v1748_v14 = vpop.eup %1747  ;;  %1767 = vrcp.f32 %v1176_v33  ;;  %v1261_v16 = vmul.f32 %v1746_v1, %v2346_v25  ;;  %1291 = vst.msk [vmem:[%s1948_s28 + $0x10] sm:$0xff] %vm720_vm2, %v1259_v36  ;;  %v1183_v33 = vadd.f32 1.0, %v2535_v50 }
 0x248   : > { %v1750_v52 = vpop.eup %1749  ;;  %1769 = vrcp.f32 %v1177_v46  ;;  %v1262_v10 = vmul.f32 %v1748_v14, %v2353_v23  ;;  %1292 = vst.msk [vmem:[%s1948_s28 + $0x18] sm:$0xff] %vm720_vm2, %v1260_v3  ;;  %v1192_v46 = vadd.f32 1.0, %v2558_v28 }
 0x249   : > { %v1752_v51 = vpop.eup %1751  ;;  %1771 = vrcp.f32 %v1178_v34  ;;  %v1263_v19 = vmul.f32 %v1750_v52, %v2356_v37  ;;  %1293 = vst.msk [vmem:[%s1948_s28 + $0x20] sm:$0xff] %vm720_vm2, %v1261_v16 }
 0x24a   : > { %v1754_v25 = vpop.eup %1753  ;;  %1773 = vrcp.f32 %v1179_v43  ;;  %v1264_v21 = vmul.f32 %v1752_v51, %v2364_v31  ;;  %1294 = vst.msk [vmem:[%s1948_s28 + $0x28] sm:$0xff] %vm720_vm2, %v1262_v10  ;;  %v2687_v10 = vld [vmem:[#allocation2_spill] sm:$0xff] }
 0x24b   : > { %v1756_v23 = vpop.eup %1755  ;;  %1775 = vrcp.f32 %v1180_v55  ;;  %v1265_v38 = vmul.f32 %v1754_v25, %v2370_v32  ;;  %1295 = vst.msk [vmem:[%s1948_s28 + $0x30] sm:$0xff] %vm720_vm2, %v1263_v19 }
 0x24c   : > { %v1758_v37 = vpop.eup %1757  ;;  %1777 = vrcp.f32 %v1181_v57  ;;  %v1266_v50 = vmul.f32 %v1756_v23, %v2376_v24  ;;  %1296 = vst.msk [vmem:[%s1948_s28 + $0x38] sm:$0xff] %vm720_vm2, %v1264_v21 }
 0x24d   : > { %v1760_v31 = vpop.eup %1759  ;;  %1779 = vrcp.f32 %v1182_v9  ;;  %v1267_v45 = vmul.f32 %v1758_v37, %v2382_v4  ;;  %1297 = vst.msk [vmem:[%s1948_s28 + $0x40] sm:$0xff] %vm720_vm2, %v1265_v38  ;;  %v2688_v9 = vld [vmem:[#allocation3_spill] sm:$0xff] }
 0x24e   : > { %v1762_v32 = vpop.eup %1761  ;;  %1781 = vrcp.f32 %v1183_v33  ;;  %v1268_v18 = vmul.f32 %v1760_v31, %v2388_v20  ;;  %1298 = vst.msk [vmem:[%s1948_s28 + $0x48] sm:$0xff] %vm720_vm2, %v1266_v50 }
 0x24f   : > { %v1764_v24 = vpop.eup %1763  ;;  %1783 = vrcp.f32 %v1184_v12  ;;  %v1269_v27 = vmul.f32 %v1762_v32, %v2394_v35  ;;  %1299 = vst.msk [vmem:[%s1948_s28 + $0x50] sm:$0xff] %vm720_vm2, %v1267_v45 }
 0x250   : > { %v1766_v4 = vpop.eup %1765  ;;  %1785 = vrcp.f32 %v1185_v49  ;;  %v1270_v5 = vmul.f32 %v1764_v24, %v2400_v44  ;;  %1300 = vst.msk [vmem:[%s1948_s28 + $0x58] sm:$0xff] %vm720_vm2, %v1268_v18 }
 0x251   : > { %v1768_v20 = vpop.eup %1767  ;;  %1787 = vrcp.f32 %v1186_v61  ;;  %v1271_v2 = vmul.f32 %v1766_v4, %v2406_v39  ;;  %1301 = vst.msk [vmem:[%s1948_s28 + $0x60] sm:$0xff] %vm720_vm2, %v1269_v27 }
 0x252   : > { %v1770_v35 = vpop.eup %1769  ;;  %1789 = vrcp.f32 %v1187_v59  ;;  %v1272_v41 = vmul.f32 %v1768_v20, %v2412_v47  ;;  %1302 = vst.msk [vmem:[%s1948_s28 + $0x68] sm:$0xff] %vm720_vm2, %v1270_v5 }
 0x253   : > { %v1772_v44 = vpop.eup %1771  ;;  %1791 = vrcp.f32 %v1188_v7  ;;  %v1273_v53 = vmul.f32 %v1770_v35, %v2418_v48  ;;  %1303 = vst.msk [vmem:[%s1948_s28 + $0x70] sm:$0xff] %vm720_vm2, %v1271_v2 }
 0x254   : > { %v1774_v39 = vpop.eup %1773  ;;  %1793 = vrcp.f32 %v1189_v11  ;;  %v1274_v40 = vmul.f32 %v1772_v44, %v2424_v63  ;;  %1304 = vst.msk [vmem:[%s1948_s28 + $0x78] sm:$0xff] %vm720_vm2, %v1272_v41 }
 0x255   : > { %v1776_v47 = vpop.eup %1775  ;;  %1795 = vrcp.f32 %v1190_v6  ;;  %v1275_v29 = vmul.f32 %v1774_v39, %v2432_v60  ;;  %1305 = vst.msk [vmem:[%s1948_s28 + $0x80] sm:$0xff] %vm720_vm2, %v1273_v53 }
 0x256   : > { %v1778_v28 = vpop.eup %1777  ;;  %1797 = vrcp.f32 %v1191_v26  ;;  %v1276_v48 = vmul.f32 %v1776_v47, %v2440_v22  ;;  %1306 = vst.msk [vmem:[%s1948_s28 + $0x88] sm:$0xff] %vm720_vm2, %v1274_v40 }
 0x257   : > { %v1780_v0 = vpop.eup %1779  ;;  %1799 = vrcp.f32 %v1192_v46  ;;  %v1277_v63 = vmul.f32 %v1778_v28, %v2448_v17  ;;  %1307 = vst.msk [vmem:[%s1948_s28 + $0x90] sm:$0xff] %vm720_vm2, %v1275_v29 }
 0x258   : > { %v1782_v34 = vpop.eup %1781  ;;  %v1278_v60 = vmul.f32 %v1780_v0, %v2456_v30  ;;  %1308 = vst.msk [vmem:[%s1948_s28 + $0x98] sm:$0xff] %vm720_vm2, %v1276_v48 }
 0x259   : > { %v1784_v36 = vpop.eup %1783  ;;  %v1279_v1 = vmul.f32 %v1782_v34, %v2464_v15  ;;  %1309 = vst.msk [vmem:[%s1948_s28 + $0xa0] sm:$0xff] %vm720_vm2, %v1277_v63 }
 0x25a   : > { %v1786_v22 = vpop.eup %1785  ;;  %v1280_v43 = vmul.f32 %v1784_v36, %v2472_v42  ;;  %1310 = vst.msk [vmem:[%s1948_s28 + $0xa8] sm:$0xff] %vm720_vm2, %v1278_v60 }
 0x25b   : > { %v1788_v17 = vpop.eup %1787  ;;  %v1281_v3 = vmul.f32 %v1786_v22, %v2480_v54  ;;  %1311 = vst.msk [vmem:[%s1948_s28 + $0xb0] sm:$0xff] %vm720_vm2, %v1279_v1 }
 0x25c   : > { %v1790_v30 = vpop.eup %1789  ;;  %v1282_v14 = vmul.f32 %v1788_v17, %v2488_v56  ;;  %1312 = vst.msk [vmem:[%s1948_s28 + $0xb8] sm:$0xff] %vm720_vm2, %v1280_v43 }
 0x25d   : > { %v1792_v15 = vpop.eup %1791  ;;  %v1283_v55 = vmul.f32 %v1790_v30, %v2496_v62  ;;  %1313 = vst.msk [vmem:[%s1948_s28 + $0xc0] sm:$0xff] %vm720_vm2, %v1281_v3 }
 0x25e   : > { %v1794_v42 = vpop.eup %1793  ;;  %v1284_v54 = vmul.f32 %v1792_v15, %v2502_v8  ;;  %1314 = vst.msk [vmem:[%s1948_s28 + $0xc8] sm:$0xff] %vm720_vm2, %v1282_v14 }
 0x25f   : > { %v1796_v16 = vpop.eup %1795  ;;  %v1285_v52 = vmul.f32 %v1794_v42, %v2508_v58  ;;  %1315 = vst.msk [vmem:[%s1948_s28 + $0xd0] sm:$0xff] %vm720_vm2, %v1283_v55 }
 0x260   : > { %v1798_v56 = vpop.eup %1797  ;;  %v1286_v57 = vmul.f32 %v1796_v16, %v2514_v13  ;;  %1316 = vst.msk [vmem:[%s1948_s28 + $0xd8] sm:$0xff] %vm720_vm2, %v1284_v54 }
 0x261   : > { %v1800_v62 = vpop.eup %1799  ;;  %v1287_v51 = vmul.f32 %v1798_v56, %v2687_v10  ;;  %1317 = vst.msk [vmem:[%s1948_s28 + $0xe0] sm:$0xff] %vm720_vm2, %v1285_v52 }
 0x262   : > { %v1288_v19 = vmul.f32 %v1800_v62, %v2688_v9  ;;  %1318 = vst.msk [vmem:[%s1948_s28 + $0xe8] sm:$0xff] %vm720_vm2, %v1286_v57 }
 0x263   : > { %1319 = vst.msk [vmem:[%s1948_s28 + $0xf0] sm:$0xff] %vm720_vm2, %v1287_v51 }
 0x264   : > { %1320 = vst.msk [vmem:[%s1948_s28 + $0xf8] sm:$0xff] %vm720_vm2, %v1288_v19 }
 0x265 PF: > { %s16_s23 = sadd.s32 1, %s1823_s23   ;;  %s2689_s21 = smov %s1819_s22 }
 0x266   : > { %p13_p5 = scmp.ge.s32.totalorder %s16_s23, 4   ;;  %s2690_s22 = smov %s2692_s24 }
 0x268   :  { %15 = sbr.rel (!%p13_p5) target bundleno = 2 (0x2), region = 86 }

</bundles_post_ra>
